<compile_context>
chip_gen: v5e
topology: v5e:2x2
jax: 0.10.0
libtpu: 0.0.40
codegen_flags: <defaults>
</compile_context>

<pallas_src>
import functools

import jax
import jax.numpy as jnp
from jax.experimental import pallas as pl
from jax.experimental.pallas import tpu as pltpu

# "practically -inf" pad value whose softplus is exactly 0 in f32
_PAD_NEG = -1e30


def _round_up(x, m):
    return ((x + m - 1) // m) * m


def _sigmoid_loss_kernel(results_ref, labels_ref, out_ref, *, topk):
    res = results_ref[...].astype(jnp.float32)             # (TB, C) f32
    lab = labels_ref[...]                                   # (TB, 1) int32
    tb, c = res.shape

    # lane iota, computed once per tile (hoisted out of the top-k loop)
    col = jax.lax.broadcasted_iota(jnp.int32, (tb, c), 1)

    # z is the logit-space "error": error = sigmoid(z), loss(elem) = softplus(z)
    z = jnp.where(col == lab, -res, res)                    # (TB, C)

    neg_inf = jnp.float32(-jnp.inf)
    row_loss = jnp.zeros((tb, 1), jnp.float32)

    # iterative top-k: extract the max `topk` times (topk is small & static).
    # Exactly one occurrence is removed per step, matching torch.topk value
    # semantics under ties (duplicated max values are returned multiple times).
    for _ in range(topk):
        m = jnp.max(z, axis=1, keepdims=True)                # (TB, 1) current max
        # softplus(m) == BCEWithLogits(logit(sigmoid(m)), target=0), applied to
        # only the k winners per row (stable form, no log/logit round-trip).
        row_loss = row_loss + jnp.maximum(m, 0.0) + jnp.log1p(jnp.exp(-jnp.abs(m)))
        # locate one occurrence of the max and knock it out with -inf
        idx = jnp.max(jnp.where(z == m, col, -1), axis=1, keepdims=True)  # (TB, 1)
        z = jnp.where(col == idx, neg_inf, z)

    # reduce the tile to a single partial sum (padded rows contribute exactly 0)
    # and emit one lane-dense (8, 128) block -> near-zero output HBM traffic.
    tile_sum = jnp.sum(row_loss, axis=0, keepdims=True)       # (1, 1)
    out_ref[...] = jnp.broadcast_to(tile_sum, (8, 128))


def _choose_block_rows(batch, classes, budget_elems=256 * 1024):
    """Pick the batch-tile so a double-buffered f32 input tile plus in-kernel
    temporaries (z, iota, selects) stay well under scoped-VMEM limits on
    v5e/v6e/v7x (~1 MiB per input tile)."""
    tb = max(8, (budget_elems // max(classes, 1)) // 8 * 8)
    tb = min(tb, 512)
    tb = min(tb, _round_up(batch, 8))
    return tb


def sigmoid_loss_pallas(results, labels, topk=10, block_rows=None):
    """Pallas equivalent of sigmoid_loss(topk).forward(results, labels)."""
    if results.ndim == 1:
        results = results.reshape(1, -1)
    b, c = results.shape
    labels2d = labels.reshape(-1, 1).astype(jnp.int32)

    # pad the class axis to a lane multiple: padded logits are huge-negative so
    # they never match a label and never enter the top-k.
    c_pad = _round_up(c, 128)
    if c_pad != c:
        results = jnp.concatenate(
            [results, jnp.full((b, c_pad - c), _PAD_NEG, results.dtype)], axis=1)

    tb = block_rows if block_rows is not None else _choose_block_rows(b, c_pad)
    b_pad = _round_up(b, tb)
    if b_pad != b:
        # padded rows: huge negative logits + label -1 -> z == -1e30 everywhere
        # -> softplus == 0, so they contribute nothing to the per-tile sum.
        results = jnp.concatenate(
            [results, jnp.full((b_pad - b, c_pad), _PAD_NEG, results.dtype)], axis=0)
        labels2d = jnp.concatenate(
            [labels2d, jnp.full((b_pad - b, 1), -1, jnp.int32)], axis=0)

    num_tiles = b_pad // tb
    kernel = functools.partial(_sigmoid_loss_kernel, topk=topk)
    partials = pl.pallas_call(
        kernel,
        grid=(num_tiles,),
        in_specs=[
            pl.BlockSpec((tb, c_pad), lambda i: (i, 0)),   # row tile of logits
            pl.BlockSpec((tb, 1), lambda i: (i, 0)),       # row tile of labels
        ],
        out_specs=pl.BlockSpec((8, 128), lambda i: (i, 0)),
        out_shape=jax.ShapeDtypeStruct((num_tiles * 8, 128), jnp.float32),
        compiler_params=pltpu.CompilerParams(
            dimension_semantics=("parallel",),             # rows independent -> megacore
            vmem_limit_bytes=32 * 1024 * 1024,
        ),
    )(results, labels2d)

    # one partial sum per tile (row 0, lane 0 of each (8, 128) block)
    total = jnp.sum(partials.reshape(num_tiles, 8, 128)[:, 0, 0])
    # final mean over the (B, topk) element losses, done in the wrapper
    return total / jnp.float32(b * topk)


def _reference_loss(results, labels, topk=10):
    # pure-JAX reference mirroring the PyTorch module literally
    if results.ndim == 1:
        results = results.reshape(1, -1)
    _, c = results.shape
    one_hot = jax.nn.one_hot(labels, c, dtype=jnp.float32)
    err = jnp.abs(one_hot - jax.nn.sigmoid(results.astype(jnp.float32)))
    vals = jax.lax.top_k(err, topk)[0]
    x = jnp.log(vals) - jnp.log1p(-vals)
    l = jnp.maximum(x, 0.0) + jnp.log1p(jnp.exp(-jnp.abs(x)))
    return jnp.mean(l)


if __name__ == "__main__":
    key = jax.random.PRNGKey(0)
    k1, k2, k3, k4, k5, k6 = jax.random.split(key, 6)

    # test 1: tile-aligned shapes
    B, C, TOPK = 8, 128, 10
    results = jax.random.normal(k1, (B, C), dtype=jnp.float32)
    labels = jax.random.randint(k2, (B,), 0, C, dtype=jnp.int32)
    loss = jax.block_until_ready(sigmoid_loss_pallas(results, labels, topk=TOPK))
    ref = _reference_loss(results, labels, topk=TOPK)
    assert jnp.allclose(loss, ref, rtol=2e-5, atol=2e-5), (loss, ref)

    # test 2: batch and class dims not tile multiples (row + lane padding paths)
    B2, C2, K2 = 5, 200, 7
    results2 = jax.random.normal(k3, (B2, C2), dtype=jnp.float32)
    labels2 = jax.random.randint(k4, (B2,), 0, C2, dtype=jnp.int32)
    loss2 = jax.block_until_ready(sigmoid_loss_pallas(results2, labels2, topk=K2))
    ref2 = _reference_loss(results2, labels2, topk=K2)
    assert jnp.allclose(loss2, ref2, rtol=2e-5, atol=2e-5), (loss2, ref2)

    # test 3: multi-tile grid (exercises the per-tile partial-sum output path)
    B3, C3, K3 = 20, 128, 5
    results3 = jax.random.normal(k5, (B3, C3), dtype=jnp.float32)
    labels3 = jax.random.randint(k6, (B3,), 0, C3, dtype=jnp.int32)
    loss3 = jax.block_until_ready(
        sigmoid_loss_pallas(results3, labels3, topk=K3, block_rows=8))
    ref3 = _reference_loss(results3, labels3, topk=K3)
    assert jnp.allclose(loss3, ref3, rtol=2e-5, atol=2e-5), (loss3, ref3)

    print("KERNEL_OK")
</pallas_src>

<mosaic_0001>
module attributes {stable_mosaic.version = 11 : i64} {
  func.func @_sigmoid_loss_kernel(%arg0: i32, %arg1: memref<8x128xf32, #tpu.memory_space<vmem>>, %arg2: memref<8x1xi32, #tpu.memory_space<vmem>>, %arg3: memref<8x128xf32, #tpu.memory_space<vmem>>) attributes {dimension_semantics = [#tpu.dimension_semantics<parallel>], iteration_bounds = array<i64: 1>, scalar_prefetch = 0 : i64, scratch_operands = 0 : i64, tpu.core_type = #tpu.core_type<tc>, window_params = [{transform_indices = @transform_0, window_bounds = array<i64: 8, 128>}, {transform_indices = @transform_1, window_bounds = array<i64: 8, 1>}, {transform_indices = @transform_2, window_bounds = array<i64: 8, 128>}]} {
    %c0 = arith.constant 0 : index
    %c0_0 = arith.constant 0 : index
    %0 = vector.load %arg1[%c0, %c0_0] : memref<8x128xf32, #tpu.memory_space<vmem>>, vector<8x128xf32>
    %c0_1 = arith.constant 0 : index
    %c0_2 = arith.constant 0 : index
    %1 = vector.load %arg2[%c0_1, %c0_2] : memref<8x1xi32, #tpu.memory_space<vmem>>, vector<8x1xi32>
    %2 = tpu.iota {dimensions = array<i32: 1>} : vector<8x128xi32>
    %3 = vector.broadcast %1 : vector<8x1xi32> to vector<8x128xi32>
    %4 = arith.cmpi eq, %2, %3 : vector<8x128xi32>
    %cst = arith.constant 0.000000e+00 : f32
    %5 = vector.broadcast %cst : f32 to vector<8x128xf32>
    %6 = arith.subf %5, %0 : vector<8x128xf32>
    %7 = arith.select %4, %6, %0 : vector<8x128xi1>, vector<8x128xf32>
    %cst_3 = arith.constant 0.000000e+00 : f32
    %8 = vector.broadcast %cst_3 : f32 to vector<8x1xf32>
    %cst_4 = arith.constant dense<0xFF800000> : vector<8xf32>
    %9 = vector.multi_reduction <maximumf>, %7, %cst_4 [1] : vector<8x128xf32> to vector<8xf32>
    %10 = vector.shape_cast %9 : vector<8xf32> to vector<8x1xf32>
    %cst_5 = arith.constant 0.000000e+00 : f32
    %11 = vector.broadcast %cst_5 : f32 to vector<8x1xf32>
    %12 = arith.maximumf %10, %11 : vector<8x1xf32>
    %13 = arith.addf %8, %12 : vector<8x1xf32>
    %14 = math.absf %10 : vector<8x1xf32>
    %cst_6 = arith.constant 0.000000e+00 : f32
    %15 = vector.broadcast %cst_6 : f32 to vector<8x1xf32>
    %16 = arith.subf %15, %14 : vector<8x1xf32>
    %17 = math.exp %16 : vector<8x1xf32>
    %18 = math.log1p %17 : vector<8x1xf32>
    %19 = arith.addf %13, %18 : vector<8x1xf32>
    %20 = vector.broadcast %10 : vector<8x1xf32> to vector<8x128xf32>
    %21 = arith.cmpf oeq, %7, %20 : vector<8x128xf32>
    %c-1_i32 = arith.constant -1 : i32
    %22 = vector.broadcast %c-1_i32 : i32 to vector<8x128xi32>
    %23 = arith.select %21, %2, %22 : vector<8x128xi1>, vector<8x128xi32>
    %cst_7 = arith.constant dense<-2147483648> : vector<8xi32>
    %24 = vector.multi_reduction <maxsi>, %23, %cst_7 [1] : vector<8x128xi32> to vector<8xi32>
    %25 = vector.shape_cast %24 : vector<8xi32> to vector<8x1xi32>
    %26 = vector.broadcast %25 : vector<8x1xi32> to vector<8x128xi32>
    %27 = arith.cmpi eq, %2, %26 : vector<8x128xi32>
    %cst_8 = arith.constant 0xFF800000 : f32
    %28 = vector.broadcast %cst_8 : f32 to vector<8x128xf32>
    %29 = arith.select %27, %28, %7 : vector<8x128xi1>, vector<8x128xf32>
    %cst_9 = arith.constant dense<0xFF800000> : vector<8xf32>
    %30 = vector.multi_reduction <maximumf>, %29, %cst_9 [1] : vector<8x128xf32> to vector<8xf32>
    %31 = vector.shape_cast %30 : vector<8xf32> to vector<8x1xf32>
    %cst_10 = arith.constant 0.000000e+00 : f32
    %32 = vector.broadcast %cst_10 : f32 to vector<8x1xf32>
    %33 = arith.maximumf %31, %32 : vector<8x1xf32>
    %34 = arith.addf %19, %33 : vector<8x1xf32>
    %35 = math.absf %31 : vector<8x1xf32>
    %cst_11 = arith.constant 0.000000e+00 : f32
    %36 = vector.broadcast %cst_11 : f32 to vector<8x1xf32>
    %37 = arith.subf %36, %35 : vector<8x1xf32>
    %38 = math.exp %37 : vector<8x1xf32>
    %39 = math.log1p %38 : vector<8x1xf32>
    %40 = arith.addf %34, %39 : vector<8x1xf32>
    %41 = vector.broadcast %31 : vector<8x1xf32> to vector<8x128xf32>
    %42 = arith.cmpf oeq, %29, %41 : vector<8x128xf32>
    %c-1_i32_12 = arith.constant -1 : i32
    %43 = vector.broadcast %c-1_i32_12 : i32 to vector<8x128xi32>
    %44 = arith.select %42, %2, %43 : vector<8x128xi1>, vector<8x128xi32>
    %cst_13 = arith.constant dense<-2147483648> : vector<8xi32>
    %45 = vector.multi_reduction <maxsi>, %44, %cst_13 [1] : vector<8x128xi32> to vector<8xi32>
    %46 = vector.shape_cast %45 : vector<8xi32> to vector<8x1xi32>
    %47 = vector.broadcast %46 : vector<8x1xi32> to vector<8x128xi32>
    %48 = arith.cmpi eq, %2, %47 : vector<8x128xi32>
    %cst_14 = arith.constant 0xFF800000 : f32
    %49 = vector.broadcast %cst_14 : f32 to vector<8x128xf32>
    %50 = arith.select %48, %49, %29 : vector<8x128xi1>, vector<8x128xf32>
    %cst_15 = arith.constant dense<0xFF800000> : vector<8xf32>
    %51 = vector.multi_reduction <maximumf>, %50, %cst_15 [1] : vector<8x128xf32> to vector<8xf32>
    %52 = vector.shape_cast %51 : vector<8xf32> to vector<8x1xf32>
    %cst_16 = arith.constant 0.000000e+00 : f32
    %53 = vector.broadcast %cst_16 : f32 to vector<8x1xf32>
    %54 = arith.maximumf %52, %53 : vector<8x1xf32>
    %55 = arith.addf %40, %54 : vector<8x1xf32>
    %56 = math.absf %52 : vector<8x1xf32>
    %cst_17 = arith.constant 0.000000e+00 : f32
    %57 = vector.broadcast %cst_17 : f32 to vector<8x1xf32>
    %58 = arith.subf %57, %56 : vector<8x1xf32>
    %59 = math.exp %58 : vector<8x1xf32>
    %60 = math.log1p %59 : vector<8x1xf32>
    %61 = arith.addf %55, %60 : vector<8x1xf32>
    %62 = vector.broadcast %52 : vector<8x1xf32> to vector<8x128xf32>
    %63 = arith.cmpf oeq, %50, %62 : vector<8x128xf32>
    %c-1_i32_18 = arith.constant -1 : i32
    %64 = vector.broadcast %c-1_i32_18 : i32 to vector<8x128xi32>
    %65 = arith.select %63, %2, %64 : vector<8x128xi1>, vector<8x128xi32>
    %cst_19 = arith.constant dense<-2147483648> : vector<8xi32>
    %66 = vector.multi_reduction <maxsi>, %65, %cst_19 [1] : vector<8x128xi32> to vector<8xi32>
    %67 = vector.shape_cast %66 : vector<8xi32> to vector<8x1xi32>
    %68 = vector.broadcast %67 : vector<8x1xi32> to vector<8x128xi32>
    %69 = arith.cmpi eq, %2, %68 : vector<8x128xi32>
    %cst_20 = arith.constant 0xFF800000 : f32
    %70 = vector.broadcast %cst_20 : f32 to vector<8x128xf32>
    %71 = arith.select %69, %70, %50 : vector<8x128xi1>, vector<8x128xf32>
    %cst_21 = arith.constant dense<0xFF800000> : vector<8xf32>
    %72 = vector.multi_reduction <maximumf>, %71, %cst_21 [1] : vector<8x128xf32> to vector<8xf32>
    %73 = vector.shape_cast %72 : vector<8xf32> to vector<8x1xf32>
    %cst_22 = arith.constant 0.000000e+00 : f32
    %74 = vector.broadcast %cst_22 : f32 to vector<8x1xf32>
    %75 = arith.maximumf %73, %74 : vector<8x1xf32>
    %76 = arith.addf %61, %75 : vector<8x1xf32>
    %77 = math.absf %73 : vector<8x1xf32>
    %cst_23 = arith.constant 0.000000e+00 : f32
    %78 = vector.broadcast %cst_23 : f32 to vector<8x1xf32>
    %79 = arith.subf %78, %77 : vector<8x1xf32>
    %80 = math.exp %79 : vector<8x1xf32>
    %81 = math.log1p %80 : vector<8x1xf32>
    %82 = arith.addf %76, %81 : vector<8x1xf32>
    %83 = vector.broadcast %73 : vector<8x1xf32> to vector<8x128xf32>
    %84 = arith.cmpf oeq, %71, %83 : vector<8x128xf32>
    %c-1_i32_24 = arith.constant -1 : i32
    %85 = vector.broadcast %c-1_i32_24 : i32 to vector<8x128xi32>
    %86 = arith.select %84, %2, %85 : vector<8x128xi1>, vector<8x128xi32>
    %cst_25 = arith.constant dense<-2147483648> : vector<8xi32>
    %87 = vector.multi_reduction <maxsi>, %86, %cst_25 [1] : vector<8x128xi32> to vector<8xi32>
    %88 = vector.shape_cast %87 : vector<8xi32> to vector<8x1xi32>
    %89 = vector.broadcast %88 : vector<8x1xi32> to vector<8x128xi32>
    %90 = arith.cmpi eq, %2, %89 : vector<8x128xi32>
    %cst_26 = arith.constant 0xFF800000 : f32
    %91 = vector.broadcast %cst_26 : f32 to vector<8x128xf32>
    %92 = arith.select %90, %91, %71 : vector<8x128xi1>, vector<8x128xf32>
    %cst_27 = arith.constant dense<0xFF800000> : vector<8xf32>
    %93 = vector.multi_reduction <maximumf>, %92, %cst_27 [1] : vector<8x128xf32> to vector<8xf32>
    %94 = vector.shape_cast %93 : vector<8xf32> to vector<8x1xf32>
    %cst_28 = arith.constant 0.000000e+00 : f32
    %95 = vector.broadcast %cst_28 : f32 to vector<8x1xf32>
    %96 = arith.maximumf %94, %95 : vector<8x1xf32>
    %97 = arith.addf %82, %96 : vector<8x1xf32>
    %98 = math.absf %94 : vector<8x1xf32>
    %cst_29 = arith.constant 0.000000e+00 : f32
    %99 = vector.broadcast %cst_29 : f32 to vector<8x1xf32>
    %100 = arith.subf %99, %98 : vector<8x1xf32>
    %101 = math.exp %100 : vector<8x1xf32>
    %102 = math.log1p %101 : vector<8x1xf32>
    %103 = arith.addf %97, %102 : vector<8x1xf32>
    %104 = vector.broadcast %94 : vector<8x1xf32> to vector<8x128xf32>
    %105 = arith.cmpf oeq, %92, %104 : vector<8x128xf32>
    %c-1_i32_30 = arith.constant -1 : i32
    %106 = vector.broadcast %c-1_i32_30 : i32 to vector<8x128xi32>
    %107 = arith.select %105, %2, %106 : vector<8x128xi1>, vector<8x128xi32>
    %cst_31 = arith.constant dense<-2147483648> : vector<8xi32>
    %108 = vector.multi_reduction <maxsi>, %107, %cst_31 [1] : vector<8x128xi32> to vector<8xi32>
    %109 = vector.shape_cast %108 : vector<8xi32> to vector<8x1xi32>
    %110 = vector.broadcast %109 : vector<8x1xi32> to vector<8x128xi32>
    %111 = arith.cmpi eq, %2, %110 : vector<8x128xi32>
    %cst_32 = arith.constant 0xFF800000 : f32
    %112 = vector.broadcast %cst_32 : f32 to vector<8x128xf32>
    %113 = arith.select %111, %112, %92 : vector<8x128xi1>, vector<8x128xf32>
    %cst_33 = arith.constant dense<0xFF800000> : vector<8xf32>
    %114 = vector.multi_reduction <maximumf>, %113, %cst_33 [1] : vector<8x128xf32> to vector<8xf32>
    %115 = vector.shape_cast %114 : vector<8xf32> to vector<8x1xf32>
    %cst_34 = arith.constant 0.000000e+00 : f32
    %116 = vector.broadcast %cst_34 : f32 to vector<8x1xf32>
    %117 = arith.maximumf %115, %116 : vector<8x1xf32>
    %118 = arith.addf %103, %117 : vector<8x1xf32>
    %119 = math.absf %115 : vector<8x1xf32>
    %cst_35 = arith.constant 0.000000e+00 : f32
    %120 = vector.broadcast %cst_35 : f32 to vector<8x1xf32>
    %121 = arith.subf %120, %119 : vector<8x1xf32>
    %122 = math.exp %121 : vector<8x1xf32>
    %123 = math.log1p %122 : vector<8x1xf32>
    %124 = arith.addf %118, %123 : vector<8x1xf32>
    %125 = vector.broadcast %115 : vector<8x1xf32> to vector<8x128xf32>
    %126 = arith.cmpf oeq, %113, %125 : vector<8x128xf32>
    %c-1_i32_36 = arith.constant -1 : i32
    %127 = vector.broadcast %c-1_i32_36 : i32 to vector<8x128xi32>
    %128 = arith.select %126, %2, %127 : vector<8x128xi1>, vector<8x128xi32>
    %cst_37 = arith.constant dense<-2147483648> : vector<8xi32>
    %129 = vector.multi_reduction <maxsi>, %128, %cst_37 [1] : vector<8x128xi32> to vector<8xi32>
    %130 = vector.shape_cast %129 : vector<8xi32> to vector<8x1xi32>
    %131 = vector.broadcast %130 : vector<8x1xi32> to vector<8x128xi32>
    %132 = arith.cmpi eq, %2, %131 : vector<8x128xi32>
    %cst_38 = arith.constant 0xFF800000 : f32
    %133 = vector.broadcast %cst_38 : f32 to vector<8x128xf32>
    %134 = arith.select %132, %133, %113 : vector<8x128xi1>, vector<8x128xf32>
    %cst_39 = arith.constant dense<0xFF800000> : vector<8xf32>
    %135 = vector.multi_reduction <maximumf>, %134, %cst_39 [1] : vector<8x128xf32> to vector<8xf32>
    %136 = vector.shape_cast %135 : vector<8xf32> to vector<8x1xf32>
    %cst_40 = arith.constant 0.000000e+00 : f32
    %137 = vector.broadcast %cst_40 : f32 to vector<8x1xf32>
    %138 = arith.maximumf %136, %137 : vector<8x1xf32>
    %139 = arith.addf %124, %138 : vector<8x1xf32>
    %140 = math.absf %136 : vector<8x1xf32>
    %cst_41 = arith.constant 0.000000e+00 : f32
    %141 = vector.broadcast %cst_41 : f32 to vector<8x1xf32>
    %142 = arith.subf %141, %140 : vector<8x1xf32>
    %143 = math.exp %142 : vector<8x1xf32>
    %144 = math.log1p %143 : vector<8x1xf32>
    %145 = arith.addf %139, %144 : vector<8x1xf32>
    %146 = vector.broadcast %136 : vector<8x1xf32> to vector<8x128xf32>
    %147 = arith.cmpf oeq, %134, %146 : vector<8x128xf32>
    %c-1_i32_42 = arith.constant -1 : i32
    %148 = vector.broadcast %c-1_i32_42 : i32 to vector<8x128xi32>
    %149 = arith.select %147, %2, %148 : vector<8x128xi1>, vector<8x128xi32>
    %cst_43 = arith.constant dense<-2147483648> : vector<8xi32>
    %150 = vector.multi_reduction <maxsi>, %149, %cst_43 [1] : vector<8x128xi32> to vector<8xi32>
    %151 = vector.shape_cast %150 : vector<8xi32> to vector<8x1xi32>
    %152 = vector.broadcast %151 : vector<8x1xi32> to vector<8x128xi32>
    %153 = arith.cmpi eq, %2, %152 : vector<8x128xi32>
    %cst_44 = arith.constant 0xFF800000 : f32
    %154 = vector.broadcast %cst_44 : f32 to vector<8x128xf32>
    %155 = arith.select %153, %154, %134 : vector<8x128xi1>, vector<8x128xf32>
    %cst_45 = arith.constant dense<0xFF800000> : vector<8xf32>
    %156 = vector.multi_reduction <maximumf>, %155, %cst_45 [1] : vector<8x128xf32> to vector<8xf32>
    %157 = vector.shape_cast %156 : vector<8xf32> to vector<8x1xf32>
    %cst_46 = arith.constant 0.000000e+00 : f32
    %158 = vector.broadcast %cst_46 : f32 to vector<8x1xf32>
    %159 = arith.maximumf %157, %158 : vector<8x1xf32>
    %160 = arith.addf %145, %159 : vector<8x1xf32>
    %161 = math.absf %157 : vector<8x1xf32>
    %cst_47 = arith.constant 0.000000e+00 : f32
    %162 = vector.broadcast %cst_47 : f32 to vector<8x1xf32>
    %163 = arith.subf %162, %161 : vector<8x1xf32>
    %164 = math.exp %163 : vector<8x1xf32>
    %165 = math.log1p %164 : vector<8x1xf32>
    %166 = arith.addf %160, %165 : vector<8x1xf32>
    %167 = vector.broadcast %157 : vector<8x1xf32> to vector<8x128xf32>
    %168 = arith.cmpf oeq, %155, %167 : vector<8x128xf32>
    %c-1_i32_48 = arith.constant -1 : i32
    %169 = vector.broadcast %c-1_i32_48 : i32 to vector<8x128xi32>
    %170 = arith.select %168, %2, %169 : vector<8x128xi1>, vector<8x128xi32>
    %cst_49 = arith.constant dense<-2147483648> : vector<8xi32>
    %171 = vector.multi_reduction <maxsi>, %170, %cst_49 [1] : vector<8x128xi32> to vector<8xi32>
    %172 = vector.shape_cast %171 : vector<8xi32> to vector<8x1xi32>
    %173 = vector.broadcast %172 : vector<8x1xi32> to vector<8x128xi32>
    %174 = arith.cmpi eq, %2, %173 : vector<8x128xi32>
    %cst_50 = arith.constant 0xFF800000 : f32
    %175 = vector.broadcast %cst_50 : f32 to vector<8x128xf32>
    %176 = arith.select %174, %175, %155 : vector<8x128xi1>, vector<8x128xf32>
    %cst_51 = arith.constant dense<0xFF800000> : vector<8xf32>
    %177 = vector.multi_reduction <maximumf>, %176, %cst_51 [1] : vector<8x128xf32> to vector<8xf32>
    %178 = vector.shape_cast %177 : vector<8xf32> to vector<8x1xf32>
    %cst_52 = arith.constant 0.000000e+00 : f32
    %179 = vector.broadcast %cst_52 : f32 to vector<8x1xf32>
    %180 = arith.maximumf %178, %179 : vector<8x1xf32>
    %181 = arith.addf %166, %180 : vector<8x1xf32>
    %182 = math.absf %178 : vector<8x1xf32>
    %cst_53 = arith.constant 0.000000e+00 : f32
    %183 = vector.broadcast %cst_53 : f32 to vector<8x1xf32>
    %184 = arith.subf %183, %182 : vector<8x1xf32>
    %185 = math.exp %184 : vector<8x1xf32>
    %186 = math.log1p %185 : vector<8x1xf32>
    %187 = arith.addf %181, %186 : vector<8x1xf32>
    %188 = vector.broadcast %178 : vector<8x1xf32> to vector<8x128xf32>
    %189 = arith.cmpf oeq, %176, %188 : vector<8x128xf32>
    %c-1_i32_54 = arith.constant -1 : i32
    %190 = vector.broadcast %c-1_i32_54 : i32 to vector<8x128xi32>
    %191 = arith.select %189, %2, %190 : vector<8x128xi1>, vector<8x128xi32>
    %cst_55 = arith.constant dense<-2147483648> : vector<8xi32>
    %192 = vector.multi_reduction <maxsi>, %191, %cst_55 [1] : vector<8x128xi32> to vector<8xi32>
    %193 = vector.shape_cast %192 : vector<8xi32> to vector<8x1xi32>
    %194 = vector.broadcast %193 : vector<8x1xi32> to vector<8x128xi32>
    %195 = arith.cmpi eq, %2, %194 : vector<8x128xi32>
    %cst_56 = arith.constant 0xFF800000 : f32
    %196 = vector.broadcast %cst_56 : f32 to vector<8x128xf32>
    %197 = arith.select %195, %196, %176 : vector<8x128xi1>, vector<8x128xf32>
    %cst_57 = arith.constant dense<0xFF800000> : vector<8xf32>
    %198 = vector.multi_reduction <maximumf>, %197, %cst_57 [1] : vector<8x128xf32> to vector<8xf32>
    %199 = vector.shape_cast %198 : vector<8xf32> to vector<8x1xf32>
    %cst_58 = arith.constant 0.000000e+00 : f32
    %200 = vector.broadcast %cst_58 : f32 to vector<8x1xf32>
    %201 = arith.maximumf %199, %200 : vector<8x1xf32>
    %202 = arith.addf %187, %201 : vector<8x1xf32>
    %203 = math.absf %199 : vector<8x1xf32>
    %cst_59 = arith.constant 0.000000e+00 : f32
    %204 = vector.broadcast %cst_59 : f32 to vector<8x1xf32>
    %205 = arith.subf %204, %203 : vector<8x1xf32>
    %206 = math.exp %205 : vector<8x1xf32>
    %207 = math.log1p %206 : vector<8x1xf32>
    %208 = arith.addf %202, %207 : vector<8x1xf32>
    %cst_60 = arith.constant dense<0.000000e+00> : vector<1xf32>
    %209 = vector.multi_reduction <add>, %208, %cst_60 [0] : vector<8x1xf32> to vector<1xf32>
    %210 = vector.shape_cast %209 : vector<1xf32> to vector<1x1xf32>
    %211 = vector.shape_cast %210 : vector<1x1xf32> to vector<1x1xf32>
    %212 = vector.broadcast %211 : vector<1x1xf32> to vector<8x128xf32>
    %c0_61 = arith.constant 0 : index
    %c0_62 = arith.constant 0 : index
    %213 = vector.load %arg3[%c0_61, %c0_62] : memref<8x128xf32, #tpu.memory_space<vmem>>, vector<8x128xf32>
    tpu.vector_store %arg3[%c0_61, %c0_62], %212 {strides = array<i32>} : memref<8x128xf32, #tpu.memory_space<vmem>>, vector<8x128xf32>,
    return
  }
  func.func @transform_0(%arg0: i32) -> (i32, i32) {
    %c0_i32 = arith.constant 0 : i32
    %c0_i32_0 = arith.constant 0 : i32
    return %arg0, %c0_i32 : i32, i32
  }
  func.func @transform_1(%arg0: i32) -> (i32, i32) {
    %c0_i32 = arith.constant 0 : i32
    %c0_i32_0 = arith.constant 0 : i32
    return %arg0, %c0_i32 : i32, i32
  }
  func.func @transform_2(%arg0: i32) -> (i32, i32) {
    %c0_i32 = arith.constant 0 : i32
    %c0_i32_0 = arith.constant 0 : i32
    return %arg0, %c0_i32 : i32, i32
  }
}

</mosaic_0001>

<bundles_post_ra>
// kernel: tpu_custom_call.1
= control target key start
LH: loop header
LB: loop body
LE: loop exit
PB: predicated region body
PF: predicated region fallthrough
CT: control target
= control target key end

     0   :  { %s582_s0 = inlined_call_operand.vmem [shape: f32[8,128], index: 0, kind: input, shape index: {}]   ;;  %s583_s1 = inlined_call_operand.vmem [shape: s32[8,1], index: 1, kind: input, shape index: {}]   ;;  %s584_s2 = inlined_call_operand.hbm [shape: f32[8,128], index: 2, kind: output, shape index: {}]  }
   0x1   :  { %v13_v0 = vld [vmem:[%s583_s1] sm:$0xff] }
   0x2   :  { %7 = vsyncpa [#allocation3], 0  ;;  %v456_v1 = vmov 0   ;;  %v14_v2 = vlaneseq  ;;  %v12_v3 = vld [vmem:[%s582_s0] sm:$0xff]  ;;  %s457_s0 = smov [#allocation2]   ;;  %s378_s15 = sshll.u32 %s584_s2, 4  ;;  %s379_s15 = int_to_ptr.hbm [resolvable:$true] %s378_s15 }
   0x3   :  { %389 = vset.pattern.permute.xlu0 %v456_v1  ;;  %v20_v5 = vsub.f32 0.0, %v12_v3  ;;  %s376_s1 = sshll.u32 %s457_s0, 4  ;;  %s377_s1 = int_to_ptr.vmem [resolvable:$true] %s376_s1 }
   0x4   :  { %17 = vperm.xlu0 %389, %v13_v0   ;;  %v479_v4 = vand.u32 127, %v14_v2 }
  0x76   :  { %v18_v6 = vpop.permute.xlu0 %17 }
  0x77   :  { %vm19_vm0 = vcmp.eq.s32.totalorder %v479_v4, %v18_v6 }
  0x78   :  { %v21_v7 = vsel %vm19_vm0, %v20_v5, %v12_v3 }
  0x79   :  { %22 = vmax.xlane.f32.xlu0 %v21_v7 }
  0xec   :  { %v482_v8 = vpop.xlane.xlu0 %22 }
  0xed   :  { %vm40_vm1 = vcmp.eq.f32.partialorder %v21_v7, %v482_v8 }
  0xee   :  { %v41_v9 = vsel %vm40_vm1, %v479_v4, 4294967295 }
  0xef   :  { %v43_v10 = vshra.s32 %v41_v9, 16  ;;  %v42_v12 = vand.u32 65535, %v41_v9 }
  0xf1   :  { %v45_v11 = vcvt.s32.f32 %v43_v10  ;;  %v44_v14 = vcvt.s32.f32 %v42_v12 }
  0xf3   :  { %46 = vmax.xlane.f32.xlu1 %v45_v11 }
 0x166   :  { %v47_v13 = vpop.xlane.xlu1 %46 }
 0x167   :  { %vm48_vm2 = vcmp.eq.f32.partialorder %v45_v11, %v47_v13  ;;  %v53_v16 = vcvt.f32.s32 %v47_v13 }
 0x168   :  { %v49_v15 = vsel %vm48_vm2, %v44_v14, -inf }
 0x169   :  { %50 = vmax.xlane.f32.xlu1 %v49_v15  ;;  %v54_v18 = vshll.u32 %v53_v16, 16 }
 0x1dc   :  { %v51_v17 = vpop.xlane.xlu1 %50 }
 0x1dd   :  { %v52_v19 = vcvt.f32.s32 %v51_v17 }
 0x1df   :  { %v55_v20 = vadd.s32 %v54_v18, %v52_v19 }
 0x1e1   :  { %vm56_vm3 = vcmp.eq.s32.totalorder %v479_v4, %v55_v20 }
 0x1e2   :  { %v57_v21 = vsel %vm56_vm3, -inf, %v21_v7 }
 0x1e3   :  { %58 = vmax.xlane.f32.xlu2 %v57_v21 }
 0x256   :  { %v487_v22 = vpop.xlane.xlu2 %58 }
 0x257   :  { %vm76_vm4 = vcmp.eq.f32.partialorder %v57_v21, %v487_v22 }
 0x258   :  { %v77_v23 = vsel %vm76_vm4, %v479_v4, 4294967295 }
 0x259   :  { %v79_v24 = vshra.s32 %v77_v23, 16  ;;  %v78_v26 = vand.u32 65535, %v77_v23 }
 0x25b   :  { %v81_v25 = vcvt.s32.f32 %v79_v24  ;;  %v80_v28 = vcvt.s32.f32 %v78_v26 }
 0x25d   :  { %82 = vmax.xlane.f32.xlu2 %v81_v25 }
 0x2d0   :  { %v83_v27 = vpop.xlane.xlu2 %82 }
 0x2d1   :  { %vm84_vm5 = vcmp.eq.f32.partialorder %v81_v25, %v83_v27  ;;  %v89_v30 = vcvt.f32.s32 %v83_v27 }
 0x2d2   :  { %v85_v29 = vsel %vm84_vm5, %v80_v28, -inf }
 0x2d3   :  { %86 = vmax.xlane.f32.xlu1 %v85_v29  ;;  %v90_v32 = vshll.u32 %v89_v30, 16 }
 0x346   :  { %v87_v31 = vpop.xlane.xlu1 %86 }
 0x347   :  { %v88_v33 = vcvt.f32.s32 %v87_v31 }
 0x349   :  { %v91_v34 = vadd.s32 %v90_v32, %v88_v33 }
 0x34b   :  { %vm92_vm6 = vcmp.eq.s32.totalorder %v479_v4, %v91_v34 }
 0x34c   :  { %v93_v35 = vsel %vm92_vm6, -inf, %v57_v21 }
 0x34d   :  { %94 = vmax.xlane.f32.xlu2 %v93_v35 }
 0x3c0   :  { %v492_v36 = vpop.xlane.xlu2 %94 }
 0x3c1   :  { %vm112_vm7 = vcmp.eq.f32.partialorder %v93_v35, %v492_v36 }
 0x3c2   :  { %v113_v37 = vsel %vm112_vm7, %v479_v4, 4294967295 }
 0x3c3   :  { %v115_v38 = vshra.s32 %v113_v37, 16  ;;  %v114_v40 = vand.u32 65535, %v113_v37 }
 0x3c5   :  { %v117_v39 = vcvt.s32.f32 %v115_v38  ;;  %v116_v42 = vcvt.s32.f32 %v114_v40 }
 0x3c7   :  { %118 = vmax.xlane.f32.xlu1 %v117_v39 }
 0x43a   :  { %v119_v41 = vpop.xlane.xlu1 %118 }
 0x43b   :  { %vm120_vm8 = vcmp.eq.f32.partialorder %v117_v39, %v119_v41  ;;  %v125_v44 = vcvt.f32.s32 %v119_v41 }
 0x43c   :  { %v121_v43 = vsel %vm120_vm8, %v116_v42, -inf }
 0x43d   :  { %122 = vmax.xlane.f32.xlu2 %v121_v43  ;;  %v126_v46 = vshll.u32 %v125_v44, 16 }
 0x4b0   :  { %v123_v45 = vpop.xlane.xlu2 %122 }
 0x4b1   :  { %v124_v47 = vcvt.f32.s32 %v123_v45 }
 0x4b3   :  { %v127_v48 = vadd.s32 %v126_v46, %v124_v47 }
 0x4b5   :  { %vm128_vm9 = vcmp.eq.s32.totalorder %v479_v4, %v127_v48 }
 0x4b6   :  { %v129_v49 = vsel %vm128_vm9, -inf, %v93_v35 }
 0x4b7   :  { %130 = vmax.xlane.f32.xlu1 %v129_v49 }
 0x52a   :  { %v497_v50 = vpop.xlane.xlu1 %130 }
 0x52b   :  { %vm148_vm10 = vcmp.eq.f32.partialorder %v129_v49, %v497_v50 }
 0x52c   :  { %v149_v51 = vsel %vm148_vm10, %v479_v4, 4294967295 }
 0x52d   :  { %v151_v52 = vshra.s32 %v149_v51, 16  ;;  %v150_v54 = vand.u32 65535, %v149_v51 }
 0x52f   :  { %v153_v53 = vcvt.s32.f32 %v151_v52  ;;  %v152_v56 = vcvt.s32.f32 %v150_v54 }
 0x531   :  { %154 = vmax.xlane.f32.xlu2 %v153_v53 }
 0x5a4   :  { %v155_v55 = vpop.xlane.xlu2 %154 }
 0x5a5   :  { %vm156_vm11 = vcmp.eq.f32.partialorder %v153_v53, %v155_v55  ;;  %v161_v58 = vcvt.f32.s32 %v155_v55 }
 0x5a6   :  { %v157_v57 = vsel %vm156_vm11, %v152_v56, -inf }
 0x5a7   :  { %158 = vmax.xlane.f32.xlu1 %v157_v57  ;;  %v162_v60 = vshll.u32 %v161_v58, 16 }
 0x61a   :  { %v159_v59 = vpop.xlane.xlu1 %158 }
 0x61b   :  { %v160_v61 = vcvt.f32.s32 %v159_v59 }
 0x61d   :  { %v163_v62 = vadd.s32 %v162_v60, %v160_v61 }
 0x61f   :  { %vm164_vm12 = vcmp.eq.s32.totalorder %v479_v4, %v163_v62 }
 0x620   :  { %v165_v63 = vsel %vm164_vm12, -inf, %v129_v49 }
 0x621   :  { %166 = vmax.xlane.f32.xlu2 %v165_v63 }
 0x694   :  { %v502_v0 = vpop.xlane.xlu2 %166 }
 0x695   :  { %vm184_vm13 = vcmp.eq.f32.partialorder %v165_v63, %v502_v0 }
 0x696   :  { %v185_v1 = vsel %vm184_vm13, %v479_v4, 4294967295 }
 0x697   :  { %v187_v2 = vshra.s32 %v185_v1, 16  ;;  %v186_v5 = vand.u32 65535, %v185_v1 }
 0x699   :  { %v189_v3 = vcvt.s32.f32 %v187_v2  ;;  %v188_v7 = vcvt.s32.f32 %v186_v5 }
 0x69b   :  { %190 = vmax.xlane.f32.xlu1 %v189_v3 }
 0x70e   :  { %v191_v6 = vpop.xlane.xlu1 %190 }
 0x70f   :  { %vm192_vm14 = vcmp.eq.f32.partialorder %v189_v3, %v191_v6  ;;  %v197_v10 = vcvt.f32.s32 %v191_v6 }
 0x710   :  { %v193_v9 = vsel %vm192_vm14, %v188_v7, -inf }
 0x711   :  { %194 = vmax.xlane.f32.xlu2 %v193_v9  ;;  %v198_v12 = vshll.u32 %v197_v10, 16 }
 0x784   :  { %v195_v11 = vpop.xlane.xlu2 %194 }
 0x785   :  { %v196_v13 = vcvt.f32.s32 %v195_v11 }
 0x787   :  { %v199_v14 = vadd.s32 %v198_v12, %v196_v13 }
 0x789   :  { %vm200_vm15 = vcmp.eq.s32.totalorder %v479_v4, %v199_v14  ;;  %v26_v14 = vand.u32 2147483647, %v482_v8 }
 0x78a   :  { %v201_v15 = vsel %vm200_vm15, -inf, %v165_v63 }
 0x78b   :  { %202 = vmax.xlane.f32.xlu0 %v201_v15 }
 0x7fe   :  { %v507_v16 = vpop.xlane.xlu0 %202 }
 0x7ff   :  { %vm220_vm0 = vcmp.eq.f32.partialorder %v201_v15, %v507_v16 }
 0x800   :  { %v221_v17 = vsel %vm220_vm0, %v479_v4, 4294967295 }
 0x801   :  { %v223_v18 = vshra.s32 %v221_v17, 16  ;;  %v222_v20 = vand.u32 65535, %v221_v17  ;;  %v62_v17 = vand.u32 2147483647, %v487_v22 }
 0x803   :  { %v225_v19 = vcvt.s32.f32 %v223_v18  ;;  %v224_v23 = vcvt.s32.f32 %v222_v20  ;;  %v98_v20 = vand.u32 2147483647, %v492_v36 }
 0x805   :  { %226 = vmax.xlane.f32.xlu1 %v225_v19 }
 0x878   :  { %v227_v21 = vpop.xlane.xlu1 %226 }
 0x879   :  { %vm228_vm1 = vcmp.eq.f32.partialorder %v225_v19, %v227_v21  ;;  %v233_v25 = vcvt.f32.s32 %v227_v21  ;;  %v63_v19 = vsub.f32 0.0, %v62_v17 }
 0x87a   :  { %v229_v24 = vsel %vm228_vm1, %v224_v23, -inf  ;;  %v99_v23 = vsub.f32 0.0, %v98_v20 }
 0x87b   :  { %230 = vmax.xlane.f32.xlu2 %v229_v24  ;;  %v234_v27 = vshll.u32 %v233_v25, 16  ;;  %v64_v21 = vmul.f32 1.442695, %v63_v19  ;;  %v134_v24 = vand.u32 2147483647, %v497_v50 }
 0x8ee   :  { %v231_v26 = vpop.xlane.xlu2 %230 }
 0x8ef   :  { %v232_v28 = vcvt.f32.s32 %v231_v26  ;;  %v100_v26 = vmul.f32 1.442695, %v99_v23 }
 0x8f1   :  { %v235_v29 = vadd.s32 %v234_v27, %v232_v28  ;;  %v170_v27 = vand.u32 2147483647, %v502_v0 }
 0x8f3   :  { %vm236_vm2 = vcmp.eq.s32.totalorder %v479_v4, %v235_v29 }
 0x8f4   :  { %v237_v30 = vsel %vm236_vm2, -inf, %v201_v15  ;;  %v27_v15 = vsub.f32 0.0, %v26_v14 }
 0x8f5   :  { %238 = vmax.xlane.f32.xlu0 %v237_v30 }
 0x8f6   :  { %v28_v18 = vmul.f32 1.442695, %v27_v15 }
 0x8f8   :  { %390 = vpow2.f32 %v28_v18 }
 0x8f9   :  { %392 = vpow2.f32 %v64_v21 }
 0x8fa   :  { %394 = vpow2.f32 %v100_v26 }
 0x8fe   :  { %v391_v25 = vpop.eup %390 }
 0x8ff   :  { %v30_v28 = vadd.f32 1.0, %v391_v25 }
 0x901   :  { %396 = vlog2.f32 %v30_v28 }
 0x968   :  { %v512_v31 = vpop.xlane.xlu0 %238 }
 0x969   :  { %vm256_vm3 = vcmp.eq.f32.partialorder %v237_v30, %v512_v31 }
 0x96a   :  { %v257_v32 = vsel %vm256_vm3, %v479_v4, 4294967295 }
 0x96b   :  { %v259_v33 = vshra.s32 %v257_v32, 16  ;;  %v258_v35 = vand.u32 65535, %v257_v32  ;;  %v171_v32 = vsub.f32 0.0, %v170_v27 }
 0x96d   :  { %v261_v34 = vcvt.s32.f32 %v259_v33  ;;  %v260_v38 = vcvt.s32.f32 %v258_v35  ;;  %v206_v33 = vand.u32 2147483647, %v507_v16 }
 0x96f   :  { %262 = vmax.xlane.f32.xlu1 %v261_v34 }
 0x9e2   :  { %v263_v37 = vpop.xlane.xlu1 %262 }
 0x9e3   :  { %vm264_vm4 = vcmp.eq.f32.partialorder %v261_v34, %v263_v37  ;;  %v269_v40 = vcvt.f32.s32 %v263_v37  ;;  %v172_v37 = vmul.f32 1.442695, %v171_v32 }
 0x9e4   :  { %v265_v39 = vsel %vm264_vm4, %v260_v38, -inf  ;;  %v207_v38 = vsub.f32 0.0, %v206_v33 }
 0x9e5   :  { %266 = vmax.xlane.f32.xlu2 %v265_v39  ;;  %v270_v42 = vshll.u32 %v269_v40, 16  ;;  %v242_v39 = vand.u32 2147483647, %v512_v31  ;;  %v33_v40 = vmul.f32 -0.5, %v391_v25 }
 0xa58   :  { %v267_v41 = vpop.xlane.xlu2 %266 }
 0xa59   :  { %v268_v43 = vcvt.f32.s32 %v267_v41 }
 0xa5b   :  { %v271_v44 = vadd.s32 %v270_v42, %v268_v43 }
 0xa5d   :  { %vm272_vm5 = vcmp.eq.s32.totalorder %v479_v4, %v271_v44  ;;  %v208_v44 = vmul.f32 1.442695, %v207_v38 }
 0xa5e   :  { %v273_v45 = vsel %vm272_vm5, -inf, %v237_v30  ;;  %v393_v30 = vpop.eup %392 }
 0xa5f   :  { %274 = vmax.xlane.f32.xlu0 %v273_v45  ;;  %v66_v34 = vadd.f32 1.0, %v393_v30  ;;  %v395_v35 = vpop.eup %394 }
 0xa60   :  { %v397_v41 = vpop.eup %396  ;;  %v102_v42 = vadd.f32 1.0, %v395_v35  ;;  %v108_v18 = vand.u32 2147483647, %v395_v35 }
 0xa62   :  { %vm109_vm14 = vcmp.lt.f32.partialorder %v108_v18, 0.0004427343 }
 0xad2   :  { %v517_v46 = vpop.xlane.xlu0 %274 }
 0xad3   :  { %vm292_vm6 = vcmp.eq.f32.partialorder %v273_v45, %v517_v46 }
 0xad4   :  { %v293_v47 = vsel %vm292_vm6, %v479_v4, 4294967295 }
 0xad5   :  { %v295_v48 = vshra.s32 %v293_v47, 16  ;;  %v294_v51 = vand.u32 65535, %v293_v47  ;;  %v278_v47 = vand.u32 2147483647, %v517_v46 }
 0xad7   :  { %v297_v49 = vcvt.s32.f32 %v295_v48  ;;  %v296_v53 = vcvt.s32.f32 %v294_v51  ;;  %v34_v48 = vadd.f32 1.0, %v33_v40  ;;  %v69_v51 = vmul.f32 -0.5, %v393_v30 }
 0xad9   :  { %298 = vmax.xlane.f32.xlu1 %v297_v49 }
 0xb4c   :  { %v299_v52 = vpop.xlane.xlu1 %298 }
 0xb4d   :  { %vm300_vm7 = vcmp.eq.f32.partialorder %v297_v49, %v299_v52  ;;  %v305_v55 = vcvt.f32.s32 %v299_v52  ;;  %v36_v49 = vand.u32 2147483647, %v391_v25  ;;  %v32_v52 = vmul.f32 0.6931472, %v397_v41 }
 0xb4e   :  { %v301_v54 = vsel %vm300_vm7, %v296_v53, -inf }
 0xb4f   :  { %302 = vmax.xlane.f32.xlu2 %v301_v54  ;;  %v306_v57 = vshll.u32 %v305_v55, 16  ;;  %v279_v55 = vsub.f32 0.0, %v278_v47  ;;  %vm541_vm12 = vcmp.lt.f32.partialorder %v36_v49, 0.0004427343 }
 0xbc2   :  { %v303_v56 = vpop.xlane.xlu2 %302 }
 0xbc3   :  { %v304_v58 = vcvt.f32.s32 %v303_v56 }
 0xbc5   :  { %v307_v59 = vadd.s32 %v306_v57, %v304_v58  ;;  %v35_v58 = vmul.f32 %v391_v25, %v34_v48 }
 0xbc7   :  { %vm308_vm8 = vcmp.eq.s32.totalorder %v479_v4, %v307_v59 }
 0xbc8   :  { %v309_v60 = vsel %vm308_vm8, -inf, %v273_v45  ;;  %v243_v45 = vsub.f32 0.0, %v242_v39 }
 0xbc9   :  { %310 = vmax.xlane.f32.xlu0 %v309_v60 }
 0xbca   :  { %v244_v54 = vmul.f32 1.442695, %v243_v45 }
 0xc3c   :  { %v522_v61 = vpop.xlane.xlu0 %310 }
 0xc3d   :  { %vm328_vm9 = vcmp.eq.f32.partialorder %v309_v60, %v522_v61  ;;  %v314_v56 = vand.u32 2147483647, %v522_v61 }
 0xc3e   :  { %v329_v62 = vsel %vm328_vm9, %v479_v4, 4294967295 }
 0xc3f   :  { %v331_v63 = vshra.s32 %v329_v62, 16  ;;  %v330_v2 = vand.u32 65535, %v329_v62  ;;  %v70_v62 = vadd.f32 1.0, %v69_v51 }
 0xc41   :  { %v333_v1 = vcvt.s32.f32 %v331_v63  ;;  %v332_v5 = vcvt.s32.f32 %v330_v2  ;;  %v105_v63 = vmul.f32 -0.5, %v395_v35  ;;  %v72_v2 = vand.u32 2147483647, %v393_v30 }
 0xc43   :  { %334 = vmax.xlane.f32.xlu1 %v333_v1  ;;  %v106_v14 = vadd.f32 1.0, %v105_v63  ;;  %vm73_vm13 = vcmp.lt.f32.partialorder %v72_v2, 0.0004427343 }
 0xc45   :  { %v107_v26 = vmul.f32 %v395_v35, %v106_v14 }
 0xcb6   :  { %v335_v3 = vpop.xlane.xlu1 %334 }
 0xcb7   :  { %vm336_vm10 = vcmp.eq.f32.partialorder %v333_v1, %v335_v3  ;;  %v341_v7 = vcvt.f32.s32 %v335_v3  ;;  %v38_v1 = vsel %vm541_vm12, %v35_v58, %v32_v52  ;;  %v168_v52 = vmax.f32 %v502_v0, 0.0 }
 0xcb8   :  { %v337_v6 = vsel %vm336_vm10, %v332_v5, -inf  ;;  %v280_v5 = vmul.f32 1.442695, %v279_v55  ;;  %v204_v0 = vmax.f32 %v507_v16, 0.0 }
 0xcb9   :  { %338 = vmax.xlane.f32.xlu2 %v337_v6  ;;  %v342_v10 = vshll.u32 %v341_v7, 16  ;;  %v315_v6 = vsub.f32 0.0, %v314_v56 }
 0xcbb   :  { %v316_v21 = vmul.f32 1.442695, %v315_v6 }
 0xd2c   :  { %v339_v9 = vpop.xlane.xlu2 %338 }
 0xd2d   :  { %v340_v11 = vcvt.f32.s32 %v339_v9  ;;  %v24_v9 = vmax.f32 %v482_v8, 0.0  ;;  %v96_v8 = vmax.f32 %v492_v36, 0.0 }
 0xd2f   :  { %v343_v12 = vadd.s32 %v342_v10, %v340_v11  ;;  %v60_v10 = vmax.f32 %v487_v22, 0.0  ;;  %v39_v17 = vadd.f32 %v38_v1, %v24_v9 }
 0xd31   :  { %vm344_vm11 = vcmp.eq.s32.totalorder %v479_v4, %v343_v12  ;;  %v135_v4 = vsub.f32 0.0, %v134_v24  ;;  %v61_v24 = vadd.f32 %v60_v10, %v39_v17 }
 0xd32   :  { %v345_v13 = vsel %vm344_vm11, -inf, %v309_v60 }
 0xd33   :  { %346 = vmax.xlane.f32.xlu0 %v345_v13  ;;  %v136_v29 = vmul.f32 1.442695, %v135_v4  ;;  %v71_v13 = vmul.f32 %v393_v30, %v70_v62 }
 0xd35   :  { %398 = vpow2.f32 %v136_v29 }
 0xd36   :  { %400 = vlog2.f32 %v66_v34  ;;  %v132_v34 = vmax.f32 %v497_v50, 0.0 }
 0xd37   :  { %402 = vpow2.f32 %v172_v37 }
 0xd38   :  { %404 = vlog2.f32 %v102_v42 }
 0xd39   :  { %406 = vpow2.f32 %v208_v44 }
 0xd3b   :  { %v534_v43 = vpop.eup %398 }
 0xd3c   :  { %v138_v53 = vadd.f32 1.0, %v534_v43  ;;  %v401_v57 = vpop.eup %400  ;;  %v141_v15 = vmul.f32 -0.5, %v534_v43  ;;  %v144_v28 = vand.u32 2147483647, %v534_v43 }
 0xd3d   :  { %v539_v59 = vpop.eup %402  ;;  %v68_v3 = vmul.f32 0.6931472, %v401_v57 }
 0xd3e   :  { %408 = vlog2.f32 %v138_v53  ;;  %v405_v7 = vpop.eup %404  ;;  %v174_v11 = vadd.f32 1.0, %v539_v59  ;;  %v142_v4 = vadd.f32 1.0, %v141_v15  ;;  %v177_v32 = vmul.f32 -0.5, %v539_v59 }
 0xd3f   :  { %410 = vpow2.f32 %v244_v54  ;;  %v550_v12 = vpop.eup %406  ;;  %v74_v19 = vsel %vm73_vm13, %v71_v13, %v68_v3  ;;  %v104_v20 = vmul.f32 0.6931472, %v405_v7  ;;  %vm145_vm15 = vcmp.lt.f32.partialorder %v144_v28, 0.0004427343 }
 0xd40   :  { %412 = vpow2.f32 %v280_v5  ;;  %v210_v22 = vadd.f32 1.0, %v550_v12  ;;  %v75_v27 = vadd.f32 %v74_v19, %v61_v24  ;;  %v143_v38 = vmul.f32 %v534_v43, %v142_v4 }
 0xd41   :  { %414 = vlog2.f32 %v174_v11  ;;  %v110_v29 = vsel %vm109_vm14, %v107_v26, %v104_v20  ;;  %v178_v41 = vadd.f32 1.0, %v177_v32  ;;  %v213_v42 = vmul.f32 -0.5, %v550_v12 }
 0xd42   :  { %416 = vpow2.f32 %v316_v21  ;;  %v97_v33 = vadd.f32 %v96_v8, %v75_v27  ;;  %v180_v45 = vand.u32 2147483647, %v539_v59  ;;  %v216_v57 = vand.u32 2147483647, %v550_v12 }
 0xd43   :  { %418 = vlog2.f32 %v210_v22  ;;  %v179_v43 = vmul.f32 %v539_v59, %v178_v41  ;;  %v214_v54 = vadd.f32 1.0, %v213_v42  ;;  %v240_v15 = vmax.f32 %v512_v31, 0.0 }
 0xd44   :  { %v409_v23 = vpop.eup %408  ;;  %v111_v39 = vadd.f32 %v110_v29, %v97_v33  ;;  %vm181_vm0 = vcmp.lt.f32.partialorder %v180_v45, 0.0004427343  ;;  %vm217_vm1 = vcmp.lt.f32.partialorder %v216_v57, 0.0004427343  ;;  %v276_v8 = vmax.f32 %v517_v46, 0.0 }
 0xd45   :  { %v555_v25 = vpop.eup %410  ;;  %v140_v30 = vmul.f32 0.6931472, %v409_v23  ;;  %v215_v3 = vmul.f32 %v550_v12, %v214_v54  ;;  %v312_v33 = vmax.f32 %v522_v61, 0.0 }
 0xd46   :  { %v246_v36 = vadd.f32 1.0, %v555_v25  ;;  %v413_v37 = vpop.eup %412  ;;  %v133_v44 = vadd.f32 %v132_v34, %v111_v39  ;;  %v249_v55 = vmul.f32 -0.5, %v555_v25  ;;  %v252_v9 = vand.u32 2147483647, %v555_v25 }
 0xd47   :  { %v415_v35 = vpop.eup %414  ;;  %v146_v40 = vsel %vm145_vm15, %v143_v38, %v140_v30  ;;  %v282_v47 = vadd.f32 1.0, %v413_v37  ;;  %v285_v5 = vmul.f32 -0.5, %v413_v37  ;;  %v288_v19 = vand.u32 2147483647, %v413_v37 }
 0xd48   :  { %420 = vlog2.f32 %v246_v36  ;;  %v417_v48 = vpop.eup %416  ;;  %v176_v50 = vmul.f32 0.6931472, %v415_v35  ;;  %v147_v51 = vadd.f32 %v146_v40, %v133_v44  ;;  %v250_v59 = vadd.f32 1.0, %v249_v55 }
 0xd49   :  { %v419_v49 = vpop.eup %418  ;;  %422 = vlog2.f32 %v282_v47  ;;  %v318_v58 = vadd.f32 1.0, %v417_v48  ;;  %v286_v16 = vadd.f32 1.0, %v285_v5  ;;  %v321_v18 = vmul.f32 -0.5, %v417_v48 }
 0xd4a   :  { %v182_v60 = vsel %vm181_vm0, %v179_v43, %v176_v50  ;;  %v212_v62 = vmul.f32 0.6931472, %v419_v49  ;;  %v169_v2 = vadd.f32 %v168_v52, %v147_v51  ;;  %v251_v17 = vmul.f32 %v555_v25, %v250_v59 }
 0xd4b   :  { %424 = vlog2.f32 %v318_v58  ;;  %vm253_vm2 = vcmp.lt.f32.partialorder %v252_v9, 0.0004427343  ;;  %v287_v26 = vmul.f32 %v413_v37, %v286_v16  ;;  %v322_v4 = vadd.f32 1.0, %v321_v18 }
 0xd4c   :  { %v183_v7 = vadd.f32 %v182_v60, %v169_v2  ;;  %v218_v10 = vsel %vm217_vm1, %v215_v3, %v212_v62  ;;  %vm289_vm3 = vcmp.lt.f32.partialorder %v288_v19, 0.0004427343  ;;  %v324_v28 = vand.u32 2147483647, %v417_v48 }
 0xd4d   :  { %v323_v34 = vmul.f32 %v417_v48, %v322_v4 }
 0xd4e   :  { %v421_v1 = vpop.eup %420  ;;  %v205_v14 = vadd.f32 %v204_v0, %v183_v7  ;;  %vm325_vm4 = vcmp.lt.f32.partialorder %v324_v28, 0.0004427343 }
 0xd4f   :  { %v248_v11 = vmul.f32 0.6931472, %v421_v1  ;;  %v423_v13 = vpop.eup %422 }
 0xd50   :  { %v219_v12 = vadd.f32 %v218_v10, %v205_v14  ;;  %v284_v21 = vmul.f32 0.6931472, %v423_v13 }
 0xd51   :  { %v254_v20 = vsel %vm253_vm2, %v251_v17, %v248_v11  ;;  %v425_v23 = vpop.eup %424 }
 0xd52   :  { %v241_v24 = vadd.f32 %v240_v15, %v219_v12  ;;  %v290_v29 = vsel %vm289_vm3, %v287_v26, %v284_v21  ;;  %v320_v25 = vmul.f32 0.6931472, %v425_v23 }
 0xd54   :  { %v255_v27 = vadd.f32 %v254_v20, %v241_v24  ;;  %v326_v38 = vsel %vm325_vm4, %v323_v34, %v320_v25 }
 0xd56   :  { %v277_v32 = vadd.f32 %v276_v8, %v255_v27 }
 0xd58   :  { %v291_v36 = vadd.f32 %v290_v29, %v277_v32 }
 0xd5a   :  { %v313_v46 = vadd.f32 %v312_v33, %v291_v36 }
 0xd5c   :  { %v327_v41 = vadd.f32 %v326_v38, %v313_v46 }
 0xda6   :  { %v565_v53 = vpop.xlane.xlu0 %346 }
 0xda7   :  { %v350_v56 = vand.u32 2147483647, %v565_v53  ;;  %v348_v37 = vmax.f32 %v565_v53, 0.0 }
 0xda9   :  { %v351_v63 = vsub.f32 0.0, %v350_v56  ;;  %v349_v45 = vadd.f32 %v348_v37, %v327_v41 }
 0xdab   :  { %v352_v6 = vmul.f32 1.442695, %v351_v63 }
 0xdad   :  { %426 = vpow2.f32 %v352_v6 }
 0xdb3   :  { %v427_v22 = vpop.eup %426 }
 0xdb4   :  { %v354_v31 = vadd.f32 1.0, %v427_v22  ;;  %v357_v30 = vmul.f32 -0.5, %v427_v22  ;;  %v360_v39 = vand.u32 2147483647, %v427_v22 }
 0xdb6   :  { %428 = vlog2.f32 %v354_v31  ;;  %v358_v35 = vadd.f32 1.0, %v357_v30  ;;  %vm361_vm5 = vcmp.lt.f32.partialorder %v360_v39, 0.0004427343 }
 0xdb8   :  { %v359_v44 = vmul.f32 %v427_v22, %v358_v35 }
 0xdbc   :  { %v429_v40 = vpop.eup %428 }
 0xdbd   :  { %v356_v42 = vmul.f32 0.6931472, %v429_v40 }
 0xdbf   :  { %v362_v47 = vsel %vm361_vm5, %v359_v44, %v356_v42 }
 0xdc0   :  { %v363_v50 = vadd.f32 %v362_v47, %v349_v45 }
 0xdc2   :  { %v364_v49 = vrot.slane %v363_v50, 4 }
 0xdc4   :  { %v365_v61 = vadd.f32 %v364_v49, %v363_v50 }
 0xdc6   :  { %v366_v51 = vrot.slane %v365_v61, 2 }
 0xdc8   :  { %v367_v48 = vadd.f32 %v366_v51, %v365_v61 }
 0xdca   :  { %v368_v52 = vrot.slane %v367_v48, 1 }
 0xdcc   :  { %v369_v53 = vadd.f32 %v368_v52, %v367_v48 }
 0xdce   :  { %370 = vst [vmem:[#allocation2] sm:$0xff] %v369_v53 }
 0xdcf   :  { %381 = dma.vmem_to_hbm [thread:$0]  %s377_s1, 128, %s379_s15, [#allocation3]  }
 0xdd0   :  { %454 = dma.done.wait [#allocation3], 128  }
 0xdd1   :  { %455 = vsyncadd [#allocation3], 4294967168 }
 0xdd2   :  { %386 = vsyncpa [#allocation3], 1 }

</bundles_post_ra>
